<compile_context>
chip_gen: v7x
topology: tpu7x:2x2x1
jax: 0.10.0
libtpu: 0.0.40
codegen_flags: <defaults>
</compile_context>

<pallas_src>
import jax
import jax.numpy as jnp
from jax.experimental import pallas as pl
from jax.experimental.pallas import tpu as pltpu

LANE = 128


def _cdiv(a, b):
    return -(-a // b)


def _round_up(a, b):
    return _cdiv(a, b) * b


def _pick_spatial_tile(HW, C, itemsize_x, N, target_tile_bytes, min_grid_steps=8):
    """Pick a balanced, 128-lane-aligned spatial tile size and tile count."""
    hw_pad = _round_up(HW, LANE)
    # Lane cap from the per-tile byte budget (HBM-bound -> want >= ~1 MiB tiles).
    cap = (target_tile_bytes // max(C * itemsize_x, 1)) // LANE * LANE
    cap = max(LANE, min(cap, hw_pad))
    # Balanced split: fix the tile count first so the last tile is not a thin,
    # heavily padded remainder (uniform step times, no extra masked stores).
    n_hw = _cdiv(HW, cap)
    # Keep the total grid >= min_grid_steps (megacore sharding on v7x + pipeline
    # depth) as long as HW can still be split into >=128-lane tiles.
    if N * n_hw < min_grid_steps:
        n_hw = max(1, min(hw_pad // LANE, _cdiv(min_grid_steps, max(N, 1))))
    t_hw = LANE * _cdiv(_cdiv(HW, n_hw), LANE)
    n_hw = _cdiv(HW, t_hw)
    return t_hw, n_hw


def _conv1x1_series_kernel(x_ref, w_ref, b_ref, o_ref):
    # x_ref: (C, t_hw)  spatial tile of one image, channels on sublanes, HW on lanes
    # w_ref: (C, C)     BN-folded conv weight (grid-resident)
    # b_ref: (C, 1)     BN-folded bias column (f32), broadcast along lanes
    # o_ref: (C, t_hw)  output tile
    x = x_ref[...]
    # 1x1 conv == W @ X. Cast x to the weight dtype only if they differ
    # (bf16 fast path / force_bf16_matmul); f32 accumulation on the MXU.
    y = jnp.dot(w_ref[...], x.astype(w_ref.dtype), preferred_element_type=jnp.float32)
    y = y + b_ref[...]                                            # folded BN shift
    o_ref[...] = (y + x.astype(jnp.float32)).astype(o_ref.dtype)  # residual: y += x


def conv1x1_series_adapters(x_nchw, weight, gamma, beta, running_mean, running_var,
                            eps=1e-5, t_hw=None, force_bf16_matmul=False,
                            target_tile_bytes=2 * 1024 * 1024):
    """x_nchw: (N, C, H, W); weight: (C, C, 1, 1) from nn.Conv2d(C, C, 1, bias=False)."""
    N, C, H, W = x_nchw.shape
    HW = H * W
    dtype = x_nchw.dtype

    # Fold BN (eval mode) into the conv weight + a bias column:
    #   y = W @ (scale*x + shift) = (W * scale[None,:]) @ x + (W @ shift)
    scale = (gamma / jnp.sqrt(running_var + eps)).astype(jnp.float32)        # (C,)
    shift = (beta - running_mean * scale).astype(jnp.float32)                # (C,)
    w2d = weight.reshape(C, C).astype(jnp.float32)                           # (C_out, C_in)
    w_fold = w2d * scale[None, :]                                            # (C, C)
    bias = (w2d @ shift).reshape(C, 1).astype(jnp.float32)                   # (C, 1)

    # MXU operand dtype: bf16 when activations are bf16 (or when forced), else f32.
    mxu_dtype = jnp.bfloat16 if (dtype == jnp.bfloat16 or force_bf16_matmul) else jnp.float32
    w_fold = w_fold.astype(mxu_dtype)

    # Native layout: (N, C, H, W) -> (N, C, H*W) is a free (metadata) reshape.
    x3d = x_nchw.reshape(N, C, HW)

    itemsize_x = jnp.dtype(dtype).itemsize
    itemsize_w = jnp.dtype(mxu_dtype).itemsize

    if t_hw is None:
        t_hw, n_hw = _pick_spatial_tile(HW, C, itemsize_x, N, target_tile_bytes)
    else:
        t_hw = _round_up(min(t_hw, _round_up(HW, LANE)), LANE)
        n_hw = _cdiv(HW, t_hw)

    # VMEM budget: double-buffered x/out tiles + (default double-buffered) resident
    # weight/bias + f32 matmul result and residual/cast temporaries in the epilogue.
    tile_x_bytes = C * t_hw * itemsize_x
    need = (2 * tile_x_bytes                       # x input, double-buffered
            + 2 * tile_x_bytes                     # output, double-buffered
            + 2 * C * C * itemsize_w               # folded weight buffers
            + 2 * C * LANE * 4                     # bias column (pads to 128 lanes in VMEM)
            + 2 * C * t_hw * 4)                    # f32 y intermediate + residual temp
    vmem_limit = int(need * 1.25)
    # Floor at the common 16 MiB scoped default (never shrink the compiler's scratch);
    # cap at 48 MiB so there is headroom on v7x (64 MiB physical per TensorCore).
    vmem_limit = min(max(vmem_limit, 16 * 1024 * 1024), 48 * 1024 * 1024)

    cost = pl.CostEstimate(
        flops=2 * N * HW * C * C,
        bytes_accessed=2 * N * C * HW * itemsize_x + C * C * itemsize_w + C * 4,
        transcendentals=0,
    )

    out3d = pl.pallas_call(
        _conv1x1_series_kernel,
        out_shape=jax.ShapeDtypeStruct((N, C, HW), dtype),
        grid_spec=pltpu.PrefetchScalarGridSpec(
            num_scalar_prefetch=0,
            grid=(N, n_hw),
            in_specs=[
                pl.BlockSpec((None, C, t_hw), lambda n, j: (n, 0, j)),  # x tile (N squeezed)
                pl.BlockSpec((C, C), lambda n, j: (0, 0)),              # folded weight (resident)
                pl.BlockSpec((C, 1), lambda n, j: (0, 0)),              # folded bias (resident)
            ],
            out_specs=pl.BlockSpec((None, C, t_hw), lambda n, j: (n, 0, j)),
        ),
        compiler_params=pltpu.CompilerParams(
            dimension_semantics=("parallel", "parallel"),
            vmem_limit_bytes=vmem_limit,
        ),
        cost_estimate=cost,
    )(x3d, w_fold, bias)

    return out3d.reshape(N, C, H, W)


def _reference(x_nchw, weight, gamma, beta, running_mean, running_var, eps=1e-5):
    # Pure-JAX reference of: Conv2d(1x1, no bias)(BatchNorm2d_eval(x)) + x
    scale = gamma / jnp.sqrt(running_var + eps)
    shift = beta - running_mean * scale
    xbn = x_nchw * scale[None, :, None, None] + shift[None, :, None, None]
    w = weight.reshape(weight.shape[0], weight.shape[1])  # (C_out, C_in)
    y = jnp.einsum("nchw,oc->nohw", xbn, w)
    return y + x_nchw


if __name__ == "__main__":
    key = jax.random.PRNGKey(0)
    k_x, k_w, k_g, k_b, k_m, k_v = jax.random.split(key, 6)

    N, C, H, W = 2, 4, 16, 16
    x = jax.random.normal(k_x, (N, C, H, W), dtype=jnp.float32)
    weight = jax.random.normal(k_w, (C, C, 1, 1), dtype=jnp.float32) * 0.1
    gamma = 1.0 + 0.05 * jax.random.normal(k_g, (C,), dtype=jnp.float32)
    beta = 0.05 * jax.random.normal(k_b, (C,), dtype=jnp.float32)
    running_mean = 0.1 * jax.random.normal(k_m, (C,), dtype=jnp.float32)
    running_var = jnp.abs(1.0 + 0.1 * jax.random.normal(k_v, (C,), dtype=jnp.float32))

    # f32 path (exact BN fold, f32 MXU): tight tolerance.
    y = conv1x1_series_adapters(x, weight, gamma, beta, running_mean, running_var)
    y = jax.block_until_ready(y)
    y_ref = _reference(x, weight, gamma, beta, running_mean, running_var)
    assert y.shape == (N, C, H, W)
    assert jnp.allclose(y, y_ref, atol=1e-4, rtol=1e-4), "f32 mismatch vs reference"

    # bf16 fast path (bf16 MXU operands, f32 accumulate + f32 residual): bf16 tolerance.
    x_bf16 = x.astype(jnp.bfloat16)
    y_bf16 = conv1x1_series_adapters(x_bf16, weight, gamma, beta, running_mean, running_var)
    y_bf16 = jax.block_until_ready(y_bf16)
    y_bf16_ref = _reference(x_bf16.astype(jnp.float32), weight, gamma, beta,
                            running_mean, running_var)
    assert y_bf16.shape == (N, C, H, W)
    assert jnp.allclose(y_bf16.astype(jnp.float32), y_bf16_ref, atol=5e-2, rtol=5e-2), \
        "bf16 mismatch vs reference"

    # TODO(synk): BatchNorm2d training-mode (batch-stats + running-stat update) is not
    # implemented; this kernel covers the eval/inference path the adapter uses.
    print("KERNEL_OK")
</pallas_src>

<mosaic_0001>
module attributes {stable_mosaic.version = 11 : i64} {
  func.func @_conv1x1_series_kernel(%arg0: i32, %arg1: i32, %arg2: memref<1x4x128xf32, #tpu.memory_space<vmem>>, %arg3: memref<4x4xf32, #tpu.memory_space<vmem>>, %arg4: memref<4x1xf32, #tpu.memory_space<vmem>>, %arg5: memref<1x4x128xf32, #tpu.memory_space<vmem>>) attributes {dimension_semantics = [#tpu.dimension_semantics<parallel>, #tpu.dimension_semantics<parallel>], iteration_bounds = array<i64: 2, 2>, scalar_prefetch = 0 : i64, scratch_operands = 0 : i64, tpu.core_type = #tpu.core_type<tc>, window_params = [{transform_indices = @transform_0, window_bounds = array<i64: 1, 4, 128>}, {pipeline_mode = #tpu.pipeline_mode<synchronous>, transform_indices = @transform_1, window_bounds = array<i64: 4, 4>}, {pipeline_mode = #tpu.pipeline_mode<synchronous>, transform_indices = @transform_2, window_bounds = array<i64: 4, 1>}, {transform_indices = @transform_3, window_bounds = array<i64: 1, 4, 128>}]} {
    %c0 = arith.constant 0 : index
    %c0_0 = arith.constant 0 : index
    %c0_1 = arith.constant 0 : index
    %0 = vector.load %arg2[%c0, %c0_0, %c0_1] : memref<1x4x128xf32, #tpu.memory_space<vmem>>, vector<1x4x128xf32>
    %1 = vector.shape_cast %0 : vector<1x4x128xf32> to vector<4x128xf32>
    %c0_2 = arith.constant 0 : index
    %c0_3 = arith.constant 0 : index
    %2 = vector.load %arg3[%c0_2, %c0_3] : memref<4x4xf32, #tpu.memory_space<vmem>>, vector<4x4xf32>
    %cst = arith.constant dense<0.000000e+00> : vector<4x128xf32>
    %3 = tpu.matmul %2, %1, %cst {dimension_numbers = #tpu.dot_dimension_numbers<[1], [0], [0], [1], [0, 0, 1, 1], [], []>} : vector<4x4xf32>, vector<4x128xf32>, vector<4x128xf32> -> vector<4x128xf32>
    %c0_4 = arith.constant 0 : index
    %c0_5 = arith.constant 0 : index
    %4 = vector.load %arg4[%c0_4, %c0_5] : memref<4x1xf32, #tpu.memory_space<vmem>>, vector<4x1xf32>
    %5 = vector.broadcast %4 : vector<4x1xf32> to vector<4x128xf32>
    %6 = arith.addf %3, %5 : vector<4x128xf32>
    %7 = arith.addf %6, %1 : vector<4x128xf32>
    %c0_6 = arith.constant 0 : index
    %c0_7 = arith.constant 0 : index
    %c0_8 = arith.constant 0 : index
    %8 = vector.load %arg5[%c0_6, %c0_7, %c0_8] : memref<1x4x128xf32, #tpu.memory_space<vmem>>, vector<1x4x128xf32>
    %9 = vector.shape_cast %8 : vector<1x4x128xf32> to vector<4x128xf32>
    %10 = vector.shape_cast %7 : vector<4x128xf32> to vector<1x4x128xf32>
    tpu.vector_store %arg5[%c0_6, %c0_7, %c0_8], %10 {strides = array<i32>} : memref<1x4x128xf32, #tpu.memory_space<vmem>>, vector<1x4x128xf32>,
    return
  }
  func.func @transform_0(%arg0: i32, %arg1: i32) -> (i32, i32, i32) {
    %c0_i32 = arith.constant 0 : i32
    %c0_i32_0 = arith.constant 0 : i32
    return %arg0, %c0_i32, %arg1 : i32, i32, i32
  }
  func.func @transform_1(%arg0: i32, %arg1: i32) -> (i32, i32) {
    %c0_i32 = arith.constant 0 : i32
    %c0_i32_0 = arith.constant 0 : i32
    %c0_i32_1 = arith.constant 0 : i32
    return %c0_i32, %c0_i32_0 : i32, i32
  }
  func.func @transform_2(%arg0: i32, %arg1: i32) -> (i32, i32) {
    %c0_i32 = arith.constant 0 : i32
    %c0_i32_0 = arith.constant 0 : i32
    %c0_i32_1 = arith.constant 0 : i32
    return %c0_i32, %c0_i32_0 : i32, i32
  }
  func.func @transform_3(%arg0: i32, %arg1: i32) -> (i32, i32, i32) {
    %c0_i32 = arith.constant 0 : i32
    %c0_i32_0 = arith.constant 0 : i32
    return %arg0, %c0_i32, %arg1 : i32, i32, i32
  }
}

</mosaic_0001>

<bundles_post_ra>
// kernel: tpu_custom_call.1
= control target key start
LH: loop header
LB: loop body
LE: loop exit
PB: predicated region body
PF: predicated region fallthrough
CT: control target
= control target key end

     0   :  { %8 = vsyncpa [#allocation3], 0  ;;  %s854_s0 = inlined_call_operand.hbm [shape: f32[2,4,256], index: 0, kind: input, shape index: {}]   ;;  %s855_s1 = inlined_call_operand.vmem [shape: f32[4,4], index: 1, kind: input, shape index: {}]   ;;  %s856_s2 = inlined_call_operand.vmem [shape: f32[4,1], index: 2, kind: input, shape index: {}]   ;;  %s857_s3 = inlined_call_operand.hbm [shape: f32[2,4,256], index: 3, kind: output, shape index: {}]  }
   0x1   :  { %10 = vsyncpa [#allocation3 + $0x1], 0 }
   0x2   :  { %11 = vsyncpa [#allocation4], 0 }
   0x3   :  { %13 = vsyncpa [#allocation4 + $0x1], 0  ;;  %s654_s12 = smov 0   ;;  %s656_s13 = smov 0  }
   0x4   :  { %s658_s14 = smov 0   ;;  %s660_s15 = smov 0  }
   0x5   :  { %s662_s16 = smov 0   ;;  %s664_s17 = smov 0  }
   0x6   :  { %s666_s18 = smov 0   ;;  %s668_s19 = smov 0  }
   0x7 LB: > { %s393_s20 = sadd.s32 4294967295, %s627_s19   ;;  %s394_s21 = sadd.s32 4294967294, %s627_s19   ;;  %s627_s19 = sphi %s668_s19, %s19_s19   ;;  %s623_s18 = sphi %s666_s18, %s874_s18   ;;  %s619_s17 = sphi %s664_s17, %s873_s17   ;;  %s615_s16 = sphi %s662_s16, %s872_s16   ;;  %s611_s15 = sphi %s660_s15, %s871_s15   ;;  %s607_s14 = sphi %s658_s14, %s870_s14   ;;  %s603_s13 = sphi %s656_s13, %s869_s13   ;;  %s599_s12 = sphi %s654_s12, %s868_s12  }
   0x8   : > { %s28_s22 = sadd.s32 1, %s619_s17  ;;  %s31_s23 = sadd.s32 1, %s623_s18 }
   0x9   : > { %p29_p0 = scmp.ge.s32.totalorder %s28_s22, 2  ;;  %s40_s24 = sadd.s32 1, %s607_s14 }
   0xa   : > { %p47_p1 = scmp.ne.s32.totalorder %s607_s14, %s603_s13  ;;  %p48_p2 = scmp.eq.s32.totalorder %s627_s19, 0 }
   0xb   : > { %s876_s22 = smov (%p29_p0, %s28_s22), 0  ;;  %s878_s23 = smov (!%p29_p0, %s31_s23), %s623_s18 }
   0xc   : > { %s36_s25 = ssub.s32 %s619_s17, %s876_s22  ;;  %p707_p3 = por %p48_p2, %p47_p1 }
   0xd   : > { %p33_p4 = scmp.ge.s32.totalorder %s878_s23, 2  ;;  %p53_p5 = scmp.ne.s32.totalorder %s603_s13, %s599_s12 }
   0xe   : > { %p54_p6 = scmp.eq.s32.totalorder %s393_s20, 0  ;;  %p121_p7 = scmp.eq.s32.totalorder %s393_s20, 3 }
   0xf   : > { %s880_s23 = smov (%p33_p4, %s878_s23), 0  ;;  %p127_p10 = scmp.eq.s32.totalorder %s394_s21, 3 }
  0x10   : > { %p715_p8 = por %p54_p6, %p53_p5  ;;  %p719_p9 = por %p121_p7, %p47_p1 }
  0x11   : > { %s35_s29 = ssub.s32 %s623_s18, %s880_s23  ;;  %p725_p12 = por %p127_p10, %p53_p5 }
  0x12   : > { %s861_s28 = scalar_select %p719_p9, 1, 0 }
  0x13   : > { %s37_s30 = sor.u32 %s36_s25, %s35_s29  ;;  %p429_p13 = scmp.lt.s32.totalorder %s627_s19, 4 }
  0x14   : > { %p38_p11 = scmp.eq.s32.totalorder %s37_s30, 0  ;;  %s153_s5 = sand.u32 1, %s607_s14  }
  0x15   : > { %s862_s4 = scalar_select %p725_p12, 1, 0 }
  0x16   : > { %s732_s6 = scalar_select %p38_p11, %s607_s14, %s40_s24  }
  0x17   : > { %s397_s7 = sshll.u32 %s153_s5, 2  ;;  %s398_s8 = sshll.u32 %s623_s18, 1 }
  0x18   : > { %s162_s9 = sadd.s32 %s619_s17, %s398_s8  ;;  %s157_s10 = scalar_lea.vmem [#allocation2], %s397_s7 }
  0x19   : > { %s166_s11 = sshll.u32 %s157_s10, 4  ;;  %s399_s20 = sshll.u32 %s162_s9, 6  ;;  %s736_s11 = int_to_ptr.vmem [resolvable:$true] %s166_s11 }
  0x1a   : > { %s741_s29 = scalar_lea.hbm %s854_s0, %s399_s20  ;;  %p745_p0 = pnand %p429_p13, %p707_p3 }
  0x1b   : > { %s154_s30 = scalar_lea.sflag [#allocation3], %s153_s5  ;;  %s499_s7 = scalar_lea.hbm %s741_s29, 64 }
  0x1c   : > { %p500_p4 = scmp.ne.s32.totalorder %s741_s29, %s499_s7  ;;  %p501_p5 = pneg %p745_p0 }
  0x1d   : > { %s504_s9 = scalar_lea.hbm %s854_s0, 256  ;;  %p505_p3 = scmp.lt.u32.totalorder %s741_s29, %s854_s0 }
  0x1e   : > { %p502_p6 = pnand %p501_p5, %p500_p4  ;;  %p506_p10 = scmp.lt.u32.totalorder %s504_s9, %s499_s7 }
  0x1f   : > { %p508_p13 = scmp.lt.u32.totalorder %s499_s7, %s741_s29 }
  0x20   : > { %p503_p7 = pneg %p502_p6  ;;  %p507_p11 = por %p506_p10, %p505_p3 }
  0x22   : > { %p509_p1 = por %p508_p13, %p507_p11 }
  0x24   : > { %p510_p2 = pnand %p509_p1, %p503_p7 }
  0x26   : > { %513 = shalt.err (!%p510_p2)
}
  0x27   : > { %s514_s5 = scalar_lea.vmem %s736_s11, 64  ;;  %s629_s21 = smov [#allocation2]  }
  0x28   : > { %p515_p4 = scmp.ne.s32.totalorder %s736_s11, %s514_s5  ;;  %s519_s25 = sshll.u32 %s629_s21, 4  ;;  %s520_s25 = int_to_ptr.vmem [resolvable:$false] %s519_s25 }
  0x29   : > { %s521_s26 = scalar_lea.vmem %s520_s25, 128  ;;  %p522_p9 = scmp.lt.s32.totalorder %s736_s11, %s520_s25 }
  0x2a   : > { %p517_p6 = pnand %p515_p4, %p501_p5  ;;  %p523_p3 = scmp.lt.s32.totalorder %s521_s26, %s514_s5 }
  0x2c   : > { %p518_p12 = pneg %p517_p6  ;;  %p524_p10 = por %p523_p3, %p522_p9 }
  0x2e   : > { %p525_p11 = pnand %p524_p10, %p518_p12 }
  0x30   : > { %528 = shalt.err (!%p525_p11)
}
  0x31   : > { %424 = dma.hbm_to_vmem [thread:$0]  (!%p745_p0), %s741_s29, 64, %s736_s11, %s154_s30  }
  0x32   : > { %p864_p1 = scmp.lt.s32.totalorder %s627_s19, 5  ;;  %p865_p2 = scmp.ge.s32.totalorder %s627_s19, 1 }
  0x34   : > { %p172_p5 = pnand %p865_p2, %p864_p1 }
  0x35   : > { %s781_s7 = sand.u32 (!%p172_p5), 1, %s603_s13  }
  0x36   : > { %175 = sbr.rel (%p172_p5) target bundleno = 295 (0x127), region = 32  ;;  %s401_s8 = sshll.u32 (!%p172_p5), %s781_s7, 2 }
  0x37   : > { %s178_s9 = scalar_lea.sflag (!%p172_p5), [#allocation3], %s781_s7  ;;  %s181_s10 = scalar_lea.vmem (!%p172_p5), [#allocation2], %s401_s8 }
  0x3d   : > { %590 = dma.done.wait (%p715_p8), %s178_s9, 64  }
  0x3e   : > { %592 = vsyncadd (%p715_p8), %s178_s9, 4294967232  ;;  %v630_v0 = vmov 0.0   ;;  %vm631_vm0 = vmmov 0   ;;  %v632_v1 = vmov 0   ;;  %vm216_vm1 = vcmask 1043456   ;;  %s406_s27 = sshll.u32 %s615_s16, 1 }
  0x3f   : > { %412 = vmatprep.subr.mxu0 %v630_v0  ;;  %414 = vmatprep.mubr.msk.f32.mxu0 %vm631_vm0, %v630_v0  ;;  %vm212_vm2 = vcmask 31744   ;;  %v204_v2 = vld [vmem:[%s181_s10] sm:$0xf]  ;;  %s304_s20 = sadd.s32 %s611_s15, %s406_s27  ;;  %s203_s21 = scalar_lea.vmem [#allocation5], %s401_s8 }
  0x40   : > { %498 = vset.pattern.permute.xlu0 %v632_v1  ;;  %v205_v3 = vld [vmem:[%s855_s1] sm:$0xf]  ;;  %413 = vmatpush3.msk.msra.mxu0 %vm216_vm1, %v204_v2  ;;  %s407_s5 = sshll.u32 %s304_s20, 6  ;;  %s308_s25 = sshll.u32 %s203_s21, 4  ;;  %s802_s25 = int_to_ptr.vmem [resolvable:$true] %s308_s25 }
  0x41   : > { %v206_v4 = vld [vmem:[%s856_s2] sm:$0xf]  ;;  %415 = vmatmul.mubr.msk.f32.vlgmr.msra.gmra.mrb[0].mxu0 %vm212_vm2, %v205_v3  ;;  %s800_s10 = scalar_lea.hbm %s857_s3, %s407_s5  ;;  %s293_s15 = scalar_lea.sflag [#allocation4], %s781_s7 }
  0x42   : > { %209 = vperm.xlu0 %498, %v206_v4   ;;  %s529_s16 = scalar_lea.vmem %s802_s25, 64  ;;  %p866_p9 = scmp.ne.s32.totalorder %s861_s28, 0 }
  0x43   : > { %p530_p8 = scmp.ne.s32.totalorder %s802_s25, %s529_s16  ;;  %s633_s8 = smov [#allocation5]  }
  0x44   : > { %s533_s11 = sshll.u32 %s633_s8, 4  ;;  %s534_s11 = int_to_ptr.vmem [resolvable:$false] %s533_s11 }
  0x45   : > { %p531_p12 = pnand %p530_p8, %p866_p9  ;;  %s535_s29 = scalar_lea.vmem %s534_s11, 128 }
  0x46   : > { %p536_p7 = scmp.lt.s32.totalorder %s802_s25, %s534_s11  ;;  %p537_p13 = scmp.lt.s32.totalorder %s535_s29, %s529_s16 }
  0x47   : > { %p532_p0 = pneg %p531_p12 }
  0x48   : > { %p538_p4 = por %p537_p13, %p536_p7 }
  0x4a   : > { %p539_p6 = pnand %p538_p4, %p532_p0 }
  0xc1   : > { %v210_v5 = vpop.permute.xlu0 %209 }
 0x114   : > { %v286_v6 = vpop.f32.mrb[0].mxu0 }
 0x115   : > { %v287_v7 = vadd.f32 %v286_v6, %v210_v5  ;;  %v416_v8 = vpop.f32.mrb[1].mxu0 }
 0x117   : > { %v290_v9 = vadd.f32 %v287_v7, %v204_v2 }
 0x119   : > { %291 = vst [vmem:[%s203_s21] sm:$0xf] %v290_v9 }
 0x11a   : > { %542 = shalt.err (!%p539_p6)
}
 0x11b   : > { %s543_s7 = scalar_lea.hbm %s800_s10, 64  ;;  %s547_s27 = scalar_lea.hbm %s857_s3, 256 }
 0x11c   : > { %p544_p3 = scmp.ne.s32.totalorder %s800_s10, %s543_s7  ;;  %p548_p1 = scmp.lt.u32.totalorder %s800_s10, %s857_s3 }
 0x11d   : > { %p549_p2 = scmp.lt.u32.totalorder %s547_s27, %s543_s7  ;;  %p551_p8 = scmp.lt.u32.totalorder %s543_s7, %s800_s10 }
 0x11e   : > { %p545_p10 = pnand %p544_p3, %p866_p9 }
 0x11f   : > { %p550_p5 = por %p549_p2, %p548_p1 }
 0x120   : > { %p546_p11 = pneg %p545_p10 }
 0x121   : > { %p552_p12 = por %p551_p8, %p550_p5 }
 0x123   : > { %p553_p0 = pnand %p552_p12, %p546_p11 }
 0x125   : > { %556 = shalt.err (!%p553_p0)
}
 0x126   : > { %419 = dma.vmem_to_hbm [thread:$0]  (%p866_p9), %s802_s25, 64, %s800_s10, %s293_s15  }
 0x127 PF: > { %p430_p7 = scmp.ge.s32.totalorder %s627_s19, 2  ;;  %s320_s21 = sand.u32 1, %s599_s12  }
 0x128   : > { %p867_p13 = scmp.ne.s32.totalorder %s862_s4, 0  ;;  %s321_s26 = scalar_lea.sflag [#allocation4], %s320_s21 }
 0x12a   : > { %p426_p4 = pnand %p430_p7, %p867_p13 }
 0x12c   : > { %594 = dma.done.wait (!%p426_p4), %s321_s26, 64  }
 0x12d   : > { %596 = vsyncadd (!%p426_p4), %s321_s26, 4294967232  ;;  %s19_s19 = sadd.s32 1, %s627_s19   ;;  %s868_s12 = smov %s603_s13 }
 0x12e   : > { %p16_p6 = scmp.ge.s32.totalorder %s19_s19, 6   ;;  %s869_s13 = smov %s607_s14 }
 0x12f   : > { %s870_s14 = smov %s732_s6  ;;  %s871_s15 = smov %s619_s17 }
 0x130   : > { %s872_s16 = smov %s623_s18  ;;  %s873_s17 = smov %s876_s22 }
 0x131   : > { %s874_s18 = smov %s880_s23  ;;  %18 = sbr.rel (!%p16_p6) target bundleno = 7 (0x7), region = 77 }
 0x138   :  { %326 = vsyncpa [#allocation3], 1 }
 0x139   :  { %328 = vsyncpa [#allocation3 + $0x1], 1 }
 0x13a   :  { %329 = vsyncpa [#allocation4], 1 }
 0x13b   :  { %331 = vsyncpa [#allocation4 + $0x1], 1 }

</bundles_post_ra>
